<compile_context>
chip_gen: v7x
topology: tpu7x:2x2x1
jax: 0.10.0
libtpu: 0.0.40
codegen_flags: <defaults>
</compile_context>

<pallas_src>
import jax
import jax.numpy as jnp
from jax.experimental import pallas as pl
from jax.experimental.pallas import tpu as pltpu


def _round_up(x, m):
    return ((x + m - 1) // m) * m


# ----------------------------- Pallas kernel ---------------------------------
def parser_mlp_kernel(x_ref, w1_ref, b1_ref, w2_ref, b2_ref, o_ref):
    """Fused ParserModel MLP for one batch tile.

    x  : (TB, D)   concat(word, pos, dep) embedding slab (compute dtype)
    w1 : (D, H)    hidden weight (compute dtype)
    b1 : (1, H)    f32
    w2 : (H, Cp)   output weight, class dim zero-padded to 128 lanes
    b2 : (1, Cp)   f32, zero-padded
    o  : (TB, Cp)  logits after ReLU (compute dtype, lane-dense store)
    """
    # hidden Linear: single full-width MXU contraction (K = D = 256), f32 acc.
    h = jnp.dot(x_ref[...], w1_ref[...], preferred_element_type=jnp.float32)
    h += b1_ref[...]
    h = h * h * h                                   # torch.pow(output, 3), in f32
    # TODO(synk): nn.Dropout is identity in eval mode; training-mode stochastic
    # masking is intentionally not implemented here.
    out = jnp.dot(h.astype(w2_ref.dtype), w2_ref[...],
                  preferred_element_type=jnp.float32) + b2_ref[...]
    # F.relu; padded class columns stay 0, padded batch rows are sliced off.
    o_ref[...] = jnp.maximum(out, 0.0).astype(o_ref.dtype)


# ------------------------- one-time parameter prep ----------------------------
def prepare_mlp_params(w1, b1, w2, b2, compute_dtype=jnp.bfloat16):
    """Hoisted per-call prep: casts, bias reshapes, class-dim lane padding."""
    d_in, H = w1.shape
    C = w2.shape[1]
    cp = _round_up(max(C, 128), 128)        # lane-dense unmasked output stores
    return dict(
        w1=w1.astype(compute_dtype),
        b1=b1.reshape(1, H).astype(jnp.float32),
        w2=jnp.pad(w2, ((0, 0), (0, cp - C))).astype(compute_dtype),
        b2=jnp.pad(b2.reshape(1, C), ((0, 0), (0, cp - C))).astype(jnp.float32),
        num_classes=C,
        compute_dtype=jnp.dtype(compute_dtype),
    )


# ------------------------------ pallas_call wrapper ---------------------------
def parser_mlp(x, prepped, *, tb_max=8192, out_dtype=None):
    """y = relu((x @ w1 + b1)^3 @ w2 + b2) with batch-tiled grid."""
    B, d_in = x.shape
    w1, b1, w2, b2 = prepped["w1"], prepped["b1"], prepped["w2"], prepped["b2"]
    H = w1.shape[1]
    cp = w2.shape[1]
    C = prepped["num_classes"]
    cdt = prepped["compute_dtype"]
    out_dtype = cdt if out_dtype is None else out_dtype

    # Halve the tile for 4-byte compute dtypes so the double-buffered input/
    # output tiles stay well inside the 48 MiB scoped-VMEM cap (v7x-safe).
    eff_tb_max = tb_max if cdt.itemsize <= 2 else max(tb_max // 2, 256)

    # Padding-minimizing tile choice: number of tiles first, then the smallest
    # 16-aligned tile that covers the batch (16 -> full bf16 sublane packing).
    nt = pl.cdiv(B, eff_tb_max)
    tb = _round_up(pl.cdiv(B, nt), 16)
    bp = nt * tb

    x = jnp.pad(x, ((0, bp - B), (0, 0))).astype(cdt)

    out = pl.pallas_call(
        parser_mlp_kernel,
        out_shape=jax.ShapeDtypeStruct((bp, cp), out_dtype),
        grid=(nt,),
        in_specs=[
            # activations: one batch tile per grid step (auto double-buffered)
            pl.BlockSpec((tb, d_in), lambda i: (i, 0)),
            # weights/biases: constant index_map -> VMEM-resident across grid
            pl.BlockSpec((d_in, H), lambda i: (0, 0)),
            pl.BlockSpec((1, H), lambda i: (0, 0)),
            pl.BlockSpec((H, cp), lambda i: (0, 0)),
            pl.BlockSpec((1, cp), lambda i: (0, 0)),
        ],
        out_specs=pl.BlockSpec((tb, cp), lambda i: (i, 0)),
        compiler_params=pltpu.CompilerParams(
            # independent batch tiles (CORE_PARALLEL is the v7x 2-TC option)
            dimension_semantics=("parallel",),
            # 48 MiB: above v5e's 16 MiB / the 32 MiB v6e default, still leaves
            # headroom on v7x's 64 MiB physical VMEM.
            vmem_limit_bytes=48 * 1024 * 1024,
        ),
    )(x, w1, b1, w2, b2)
    return out[:B, :C]


# ------------------------------ Model wrapper ---------------------------------
class Config:
    word_features_types = 4
    pos_features_types = 2
    dep_features_types = 2
    embedding_dim = 32
    l1_hidden_size = 128
    num_classes = 3          # shift / reduce-left / reduce-right
    keep_prob = 0.5


def init_params(config, key):
    """Deterministic parameter init mirroring ParserModel.__init__ / init_weights."""
    n_w, n_p, n_d = (config.word_features_types,
                     config.pos_features_types,
                     config.dep_features_types)
    d_in = (n_w + n_p + n_d) * config.embedding_dim
    H, C = config.l1_hidden_size, config.num_classes
    initrange = 0.1

    keys = jax.random.split(key, 7)
    # Embedding tables (the torch module receives these from outside).
    vocab_w, vocab_p, vocab_d = 100, 30, 20
    word_emb = jax.random.normal(keys[0], (vocab_w, config.embedding_dim), jnp.float32)
    pos_emb = jax.random.normal(keys[1], (vocab_p, config.embedding_dim), jnp.float32)
    dep_emb = jax.random.normal(keys[2], (vocab_d, config.embedding_dim), jnp.float32)

    # nn.init.uniform_(weight, -0.1, 0.1); biases use torch Linear default
    # U(-1/sqrt(fan_in), 1/sqrt(fan_in)).
    w1 = jax.random.uniform(keys[3], (d_in, H), jnp.float32, -initrange, initrange)
    b1 = jax.random.uniform(keys[4], (1, H), jnp.float32,
                            -1.0 / jnp.sqrt(d_in), 1.0 / jnp.sqrt(d_in))
    w2 = jax.random.uniform(keys[5], (H, C), jnp.float32, -initrange, initrange)
    b2 = jax.random.uniform(keys[6], (1, C), jnp.float32,
                            -1.0 / jnp.sqrt(H), 1.0 / jnp.sqrt(H))
    return dict(word_emb=word_emb, pos_emb=pos_emb, dep_emb=dep_emb,
                w1=w1, b1=b1, w2=w2, b2=b2)


def parser_model_forward(params, prepped, word_indices, pos_indices, dep_indices,
                         tb_max=8192):
    """Full forward: embedding lookups (glue, plain JAX) + fused Pallas MLP."""
    B = word_indices.shape[0]
    # lookup_embeddings + .view(-1, n*embedding_dim) + torch.cat(..., 1).
    # The gathers, reshapes, concat and cast fuse into one XLA op feeding the
    # kernel's single activation input.
    # TODO(synk): optionally fuse the gather into the kernel (tables are ~19 KB,
    # trivially VMEM-resident) to avoid the HBM round-trip of the embedded slab.
    cdt = prepped["compute_dtype"]
    w_e = jnp.take(params["word_emb"], word_indices, axis=0).reshape(B, -1)
    p_e = jnp.take(params["pos_emb"], pos_indices, axis=0).reshape(B, -1)
    d_e = jnp.take(params["dep_emb"], dep_indices, axis=0).reshape(B, -1)
    x = jnp.concatenate([w_e, p_e, d_e], axis=1).astype(cdt)
    return parser_mlp(x, prepped, tb_max=tb_max)


def reference_forward(params, word_indices, pos_indices, dep_indices,
                      compute_dtype=jnp.float32):
    """Pure-JAX reference (matching matmul input dtype, f32 accumulation)."""
    B = word_indices.shape[0]
    w_e = jnp.take(params["word_emb"], word_indices, axis=0).reshape(B, -1)
    p_e = jnp.take(params["pos_emb"], pos_indices, axis=0).reshape(B, -1)
    d_e = jnp.take(params["dep_emb"], dep_indices, axis=0).reshape(B, -1)
    x = jnp.concatenate([w_e, p_e, d_e], axis=1).astype(compute_dtype)
    h = jnp.dot(x, params["w1"].astype(compute_dtype),
                preferred_element_type=jnp.float32) + params["b1"]
    h = h ** 3
    out = jnp.dot(h.astype(compute_dtype), params["w2"].astype(compute_dtype),
                  preferred_element_type=jnp.float32) + params["b2"]
    return jnp.maximum(out, 0.0)


if __name__ == "__main__":
    config = Config()
    params = init_params(config, jax.random.PRNGKey(0))

    B = 8
    k1, k2, k3 = jax.random.split(jax.random.PRNGKey(0), 3)
    word_indices = jax.random.randint(k1, (B, config.word_features_types), 0, 100)
    pos_indices = jax.random.randint(k2, (B, config.pos_features_types), 0, 30)
    dep_indices = jax.random.randint(k3, (B, config.dep_features_types), 0, 20)

    # f32 path: exact eval-mode semantics of the torch module (semantics check).
    prep_f32 = prepare_mlp_params(params["w1"], params["b1"], params["w2"],
                                  params["b2"], compute_dtype=jnp.float32)
    out_f32 = parser_model_forward(params, prep_f32, word_indices, pos_indices,
                                   dep_indices)
    out_f32 = jax.block_until_ready(out_f32)
    ref_f32 = reference_forward(params, word_indices, pos_indices, dep_indices,
                                compute_dtype=jnp.float32)
    assert out_f32.shape == (B, config.num_classes)
    assert jnp.allclose(out_f32, ref_f32, atol=1e-4, rtol=1e-4), "f32 mismatch"

    # bf16 path (default): MXU-native inputs, f32 accumulation + f32 epilogue,
    # bf16 logits stored (halved HBM writeback). Cube amplifies bf16 input
    # error ~3x, hence the looser tolerance; the f32 path above is the
    # semantics check.
    prep_bf16 = prepare_mlp_params(params["w1"], params["b1"], params["w2"],
                                   params["b2"], compute_dtype=jnp.bfloat16)
    out_bf16 = parser_model_forward(params, prep_bf16, word_indices, pos_indices,
                                    dep_indices)
    out_bf16 = jax.block_until_ready(out_bf16)
    ref_bf16 = reference_forward(params, word_indices, pos_indices, dep_indices,
                                 compute_dtype=jnp.bfloat16)
    assert out_bf16.shape == (B, config.num_classes)
    assert jnp.allclose(out_bf16.astype(jnp.float32), ref_bf16,
                        atol=2e-2, rtol=2e-2), "bf16 mismatch"

    print("KERNEL_OK")
</pallas_src>

<mosaic_0001>
module attributes {stable_mosaic.version = 11 : i64} {
  func.func @parser_mlp_kernel(%arg0: i32, %arg1: memref<16x256xf32, #tpu.memory_space<vmem>>, %arg2: memref<256x128xf32, #tpu.memory_space<vmem>>, %arg3: memref<1x128xf32, #tpu.memory_space<vmem>>, %arg4: memref<128x128xf32, #tpu.memory_space<vmem>>, %arg5: memref<1x128xf32, #tpu.memory_space<vmem>>, %arg6: memref<16x128xf32, #tpu.memory_space<vmem>>) attributes {dimension_semantics = [#tpu.dimension_semantics<parallel>], iteration_bounds = array<i64: 1>, scalar_prefetch = 0 : i64, scratch_operands = 0 : i64, tpu.core_type = #tpu.core_type<tc>, window_params = [{transform_indices = @transform_0, window_bounds = array<i64: 16, 256>}, {pipeline_mode = #tpu.pipeline_mode<synchronous>, transform_indices = @transform_1, window_bounds = array<i64: 256, 128>}, {pipeline_mode = #tpu.pipeline_mode<synchronous>, transform_indices = @transform_2, window_bounds = array<i64: 1, 128>}, {pipeline_mode = #tpu.pipeline_mode<synchronous>, transform_indices = @transform_3, window_bounds = array<i64: 128, 128>}, {pipeline_mode = #tpu.pipeline_mode<synchronous>, transform_indices = @transform_4, window_bounds = array<i64: 1, 128>}, {transform_indices = @transform_5, window_bounds = array<i64: 16, 128>}]} {
    %c0 = arith.constant 0 : index
    %c0_0 = arith.constant 0 : index
    %0 = vector.load %arg1[%c0, %c0_0] : memref<16x256xf32, #tpu.memory_space<vmem>>, vector<16x256xf32>
    %c0_1 = arith.constant 0 : index
    %c0_2 = arith.constant 0 : index
    %1 = vector.load %arg2[%c0_1, %c0_2] : memref<256x128xf32, #tpu.memory_space<vmem>>, vector<256x128xf32>
    %cst = arith.constant dense<0.000000e+00> : vector<16x128xf32>
    %2 = tpu.matmul %0, %1, %cst {dimension_numbers = #tpu.dot_dimension_numbers<[1], [0], [0], [1], [0, 0, 1, 1], [], []>} : vector<16x256xf32>, vector<256x128xf32>, vector<16x128xf32> -> vector<16x128xf32>
    %c0_3 = arith.constant 0 : index
    %c0_4 = arith.constant 0 : index
    %3 = vector.load %arg3[%c0_3, %c0_4] : memref<1x128xf32, #tpu.memory_space<vmem>>, vector<1x128xf32>
    %4 = vector.broadcast %3 : vector<1x128xf32> to vector<16x128xf32>
    %5 = arith.addf %2, %4 : vector<16x128xf32>
    %6 = arith.mulf %5, %5 : vector<16x128xf32>
    %7 = arith.mulf %6, %5 : vector<16x128xf32>
    %c0_5 = arith.constant 0 : index
    %c0_6 = arith.constant 0 : index
    %8 = vector.load %arg4[%c0_5, %c0_6] : memref<128x128xf32, #tpu.memory_space<vmem>>, vector<128x128xf32>
    %cst_7 = arith.constant dense<0.000000e+00> : vector<16x128xf32>
    %9 = tpu.matmul %7, %8, %cst_7 {dimension_numbers = #tpu.dot_dimension_numbers<[1], [0], [0], [1], [0, 0, 1, 1], [], []>} : vector<16x128xf32>, vector<128x128xf32>, vector<16x128xf32> -> vector<16x128xf32>
    %c0_8 = arith.constant 0 : index
    %c0_9 = arith.constant 0 : index
    %10 = vector.load %arg5[%c0_8, %c0_9] : memref<1x128xf32, #tpu.memory_space<vmem>>, vector<1x128xf32>
    %11 = vector.broadcast %10 : vector<1x128xf32> to vector<16x128xf32>
    %12 = arith.addf %9, %11 : vector<16x128xf32>
    %cst_10 = arith.constant 0.000000e+00 : f32
    %13 = vector.broadcast %cst_10 : f32 to vector<16x128xf32>
    %14 = arith.maximumf %12, %13 : vector<16x128xf32>
    %c0_11 = arith.constant 0 : index
    %c0_12 = arith.constant 0 : index
    %15 = vector.load %arg6[%c0_11, %c0_12] : memref<16x128xf32, #tpu.memory_space<vmem>>, vector<16x128xf32>
    tpu.vector_store %arg6[%c0_11, %c0_12], %14 {strides = array<i32>} : memref<16x128xf32, #tpu.memory_space<vmem>>, vector<16x128xf32>,
    return
  }
  func.func @transform_0(%arg0: i32) -> (i32, i32) {
    %c0_i32 = arith.constant 0 : i32
    %c0_i32_0 = arith.constant 0 : i32
    return %arg0, %c0_i32 : i32, i32
  }
  func.func @transform_1(%arg0: i32) -> (i32, i32) {
    %c0_i32 = arith.constant 0 : i32
    %c0_i32_0 = arith.constant 0 : i32
    %c0_i32_1 = arith.constant 0 : i32
    return %c0_i32, %c0_i32_0 : i32, i32
  }
  func.func @transform_2(%arg0: i32) -> (i32, i32) {
    %c0_i32 = arith.constant 0 : i32
    %c0_i32_0 = arith.constant 0 : i32
    %c0_i32_1 = arith.constant 0 : i32
    return %c0_i32, %c0_i32_0 : i32, i32
  }
  func.func @transform_3(%arg0: i32) -> (i32, i32) {
    %c0_i32 = arith.constant 0 : i32
    %c0_i32_0 = arith.constant 0 : i32
    %c0_i32_1 = arith.constant 0 : i32
    return %c0_i32, %c0_i32_0 : i32, i32
  }
  func.func @transform_4(%arg0: i32) -> (i32, i32) {
    %c0_i32 = arith.constant 0 : i32
    %c0_i32_0 = arith.constant 0 : i32
    %c0_i32_1 = arith.constant 0 : i32
    return %c0_i32, %c0_i32_0 : i32, i32
  }
  func.func @transform_5(%arg0: i32) -> (i32, i32) {
    %c0_i32 = arith.constant 0 : i32
    %c0_i32_0 = arith.constant 0 : i32
    return %arg0, %c0_i32 : i32, i32
  }
}

</mosaic_0001>

<bundles_post_ra>
// kernel: tpu_custom_call.1
= control target key start
LH: loop header
LB: loop body
LE: loop exit
PB: predicated region body
PF: predicated region fallthrough
CT: control target
= control target key end

     0   :  { %10 = vsyncpa [#allocation3], 0  ;;  %s664_s0 = inlined_call_operand.hbm [shape: f32[16,256], index: 0, kind: input, shape index: {}]   ;;  %s665_s1 = inlined_call_operand.hbm [shape: f32[256,128], index: 1, kind: input, shape index: {}]   ;;  %s666_s2 = inlined_call_operand.vmem [shape: f32[1,128], index: 2, kind: input, shape index: {}]   ;;  %s667_s3 = inlined_call_operand.hbm [shape: f32[128,128], index: 3, kind: input, shape index: {}]   ;;  %s668_s4 = inlined_call_operand.vmem [shape: f32[1,128], index: 4, kind: input, shape index: {}]   ;;  %s669_s5 = inlined_call_operand.hbm [shape: f32[16,128], index: 5, kind: output, shape index: {}]  }
   0x1   :  { %11 = vsyncpa [#allocation6], 0 }
   0x2   :  { %12 = vsyncpa [#allocation4], 0  ;;  %s563_s18 = smov [#allocation5]   ;;  %s469_s22 = scalar_lea.hbm %s665_s1, 4096 }
   0x3   :  { %s30_s19 = sshll.u32 %s563_s18, 4  ;;  %p470_p0 = scmp.ne.s32.totalorder %s665_s1, %s469_s22  ;;  %s31_s19 = int_to_ptr.vmem [resolvable:$true] %s30_s19 }
   0x4   :  { %p473_p1 = scmp.lt.u32.totalorder %s469_s22, %s665_s1 }
   0x6   :  { %p475_p2 = pnand %p473_p1, %p470_p0 }
   0x8   :  { %478 = shalt.err (!%p475_p2)
}
   0x9   :  { %s479_s27 = scalar_lea.vmem %s31_s19, 4096  ;;  %p484_p4 = scmp.lt.s32.totalorder %s31_s19, %s31_s19 }
   0xa   :  { %p480_p3 = scmp.ne.s32.totalorder %s31_s19, %s479_s27  ;;  %p485_p5 = scmp.lt.s32.totalorder %s479_s27, %s479_s27 }
   0xc   :  { %p486_p6 = por %p485_p5, %p484_p4 }
   0xe   :  { %p487_p7 = pnand %p486_p6, %p480_p3 }
  0x10   :  { %490 = shalt.err (!%p487_p7)
}
  0x11   :  { %s564_s28 = smov 128   ;;  %s565_s29 = smov 8  }
  0x12   :  { %36 = dma.hbm_to_vmem [thread:$0]  %s665_s1, 4096, %s31_s19, [#allocation6], %s564_s28, %s564_s28, %s565_s29  }
  0x13   :  { %s566_s7 = smov [#allocation2]   ;;  %s491_s11 = scalar_lea.hbm %s664_s0, 512 }
  0x14   :  { %s18_s8 = sshll.u32 %s566_s7, 4  ;;  %p492_p8 = scmp.ne.s32.totalorder %s664_s0, %s491_s11  ;;  %s19_s8 = int_to_ptr.vmem [resolvable:$true] %s18_s8 }
  0x15   :  { %p495_p9 = scmp.lt.u32.totalorder %s491_s11, %s664_s0 }
  0x17   :  { %p497_p10 = pnand %p495_p9, %p492_p8 }
  0x19   :  { %500 = shalt.err (!%p497_p10)
}
  0x1a   :  { %s501_s16 = scalar_lea.vmem %s19_s8, 512  ;;  %p506_p12 = scmp.lt.s32.totalorder %s19_s8, %s19_s8 }
  0x1b   :  { %p502_p11 = scmp.ne.s32.totalorder %s19_s8, %s501_s16  ;;  %p507_p13 = scmp.lt.s32.totalorder %s501_s16, %s501_s16 }
  0x1d   :  { %p508_p0 = por %p507_p13, %p506_p12 }
  0x1f   :  { %p509_p1 = pnand %p508_p0, %p502_p11 }
  0x21   :  { %512 = shalt.err (!%p509_p1)
}
  0x22   :  { %s567_s1 = smov 256   ;;  %s568_s17 = smov 16  }
  0x23   :  { %24 = dma.hbm_to_vmem [thread:$0]  %s664_s0, 512, %s19_s8, [#allocation3], %s567_s1, %s567_s1, %s568_s17  }
  0x24   :  { %s569_s20 = smov [#allocation7]   ;;  %s513_s24 = scalar_lea.hbm %s667_s3, 2048 }
  0x25   :  { %s44_s21 = sshll.u32 %s569_s20, 4  ;;  %p514_p2 = scmp.ne.s32.totalorder %s667_s3, %s513_s24  ;;  %s45_s21 = int_to_ptr.vmem [resolvable:$true] %s44_s21 }
  0x26   :  { %p517_p3 = scmp.lt.u32.totalorder %s513_s24, %s667_s3 }
  0x28   :  { %p519_p4 = pnand %p517_p3, %p514_p2 }
  0x2a   :  { %522 = shalt.err (!%p519_p4)
}
  0x2b   :  { %s523_s6 = scalar_lea.vmem %s45_s21, 2048  ;;  %p528_p6 = scmp.lt.s32.totalorder %s45_s21, %s45_s21 }
  0x2c   :  { %p524_p5 = scmp.ne.s32.totalorder %s45_s21, %s523_s6  ;;  %p529_p7 = scmp.lt.s32.totalorder %s523_s6, %s523_s6 }
  0x2e   :  { %p530_p8 = por %p529_p7, %p528_p6 }
  0x30   :  { %p531_p9 = pnand %p530_p8, %p524_p5 }
  0x32   :  { %534 = shalt.err (!%p531_p9)
}
  0x33   :  { %50 = dma.hbm_to_vmem [thread:$0]  %s667_s3, 2048, %s45_s21, [#allocation6], %s564_s28, %s564_s28, %s565_s29  }
  0x34   :  { %557 = dma.done.wait [#allocation3], 512  }
  0x35   :  { %558 = vsyncadd [#allocation3], 4294966784 }
  0x36   :  { %559 = dma.done.wait [#allocation6], 6144  }
  0x37   :  { %560 = vsyncadd [#allocation6], 4294961152  ;;  %v82_v0 = vld [vmem:[#allocation5 + $0x80] sm:$0xff]  ;;  %v83_v1 = vld [vmem:[#allocation5 + $0x88] sm:$0xff] }
  0x38   :  { %v66_v2 = vld [vmem:[#allocation5] sm:$0xff]  ;;  %v397_v3 = vpack.c.bf16 %v83_v1, %v82_v0  ;;  %v67_v4 = vld [vmem:[#allocation5 + $0x8] sm:$0xff]  ;;  %v84_v5 = vld [vmem:[#allocation5 + $0x90] sm:$0xff] }
  0x39   :  { %v85_v6 = vld [vmem:[#allocation5 + $0x98] sm:$0xff]  ;;  %v399_v7 = vpack.c.bf16 %v67_v4, %v66_v2  ;;  %v68_v9 = vld [vmem:[#allocation5 + $0x10] sm:$0xff]  ;;  %v86_v11 = vld [vmem:[#allocation5 + $0xa0] sm:$0xff] }
  0x3a   :  { %v401_v8 = vpack.c.bf16 %v85_v6, %v84_v5  ;;  %v69_v10 = vld [vmem:[#allocation5 + $0x18] sm:$0xff]  ;;  %398 = vmatprep.subr.bf16.mxu0 %v397_v3  ;;  %v87_v12 = vld [vmem:[#allocation5 + $0xa8] sm:$0xff]  ;;  %v70_v15 = vld [vmem:[#allocation5 + $0x20] sm:$0xff] }
  0x3b   :  { %400 = vmatpush3.bf16.msra.mxu0 %v399_v7  ;;  %v403_v13 = vpack.c.bf16 %v69_v10, %v68_v9  ;;  %v405_v14 = vpack.c.bf16 %v87_v12, %v86_v11  ;;  %v71_v16 = vld [vmem:[#allocation5 + $0x28] sm:$0xff]  ;;  %v88_v17 = vld [vmem:[#allocation5 + $0xb0] sm:$0xff]  ;;  %v89_v18 = vld [vmem:[#allocation5 + $0xb8] sm:$0xff] }
  0x3c   :  { %402 = vmatprep.subr.bf16.mxu0 %v401_v8  ;;  %v407_v19 = vpack.c.bf16 %v71_v16, %v70_v15  ;;  %v409_v20 = vpack.c.bf16 %v89_v18, %v88_v17  ;;  %v72_v21 = vld [vmem:[#allocation5 + $0x30] sm:$0xff]  ;;  %v73_v22 = vld [vmem:[#allocation5 + $0x38] sm:$0xff]  ;;  %v90_v23 = vld [vmem:[#allocation5 + $0xc0] sm:$0xff] }
  0x3d   :  { %v91_v24 = vld [vmem:[#allocation5 + $0xc8] sm:$0xff]  ;;  %v74_v26 = vld [vmem:[#allocation5 + $0x40] sm:$0xff]  ;;  %v411_v27 = vpack.c.bf16 %v73_v22, %v72_v21  ;;  %v186_v30 = vld [vmem:[#allocation7 + $0x10] sm:$0xff] }
  0x3e   :  { %v63_v25 = vld [vmem:[#allocation2 + $0x8] sm:$0xff]  ;;  %v184_v28 = vld [vmem:[#allocation7] sm:$0xff]  ;;  %v413_v31 = vpack.c.bf16 %v91_v24, %v90_v23  ;;  %v92_v33 = vld [vmem:[#allocation5 + $0xd0] sm:$0xff] }
  0x3f   :  { %404 = vmatpush3.bf16.msra.mxu0 %v403_v13  ;;  %169 = vmatprep.mubr.f32.mxu0 %v63_v25  ;;  %v185_v29 = vld [vmem:[#allocation7 + $0x8] sm:$0xff]  ;;  %v187_v35 = vld [vmem:[#allocation7 + $0x18] sm:$0xff]  ;;  %v188_v38 = vld [vmem:[#allocation7 + $0x20] sm:$0xff] }
  0x40   :  { %406 = vmatprep.subr.bf16.mxu0 %v405_v14  ;;  %v75_v32 = vld [vmem:[#allocation5 + $0x48] sm:$0xff]  ;;  %v429_v34 = vpack.c.bf16 %v185_v29, %v184_v28  ;;  %v93_v36 = vld [vmem:[#allocation5 + $0xd8] sm:$0xff]  ;;  %v433_v37 = vpack.c.bf16 %v187_v35, %v186_v30  ;;  %v76_v42 = vld [vmem:[#allocation5 + $0x50] sm:$0xff] }
  0x41   :  { %v189_v39 = vld [vmem:[#allocation7 + $0x28] sm:$0xff]  ;;  %v415_v40 = vpack.c.bf16 %v75_v32, %v74_v26  ;;  %v417_v41 = vpack.c.bf16 %v93_v36, %v92_v33  ;;  %v77_v43 = vld [vmem:[#allocation5 + $0x58] sm:$0xff]  ;;  %v94_v44 = vld [vmem:[#allocation5 + $0xe0] sm:$0xff] }
  0x42   :  { %430 = vmatprep.subr.bf16.mxu1 %v429_v34  ;;  %v437_v45 = vpack.c.bf16 %v189_v39, %v188_v38  ;;  %v95_v46 = vld [vmem:[#allocation5 + $0xe8] sm:$0xff]  ;;  %v190_v47 = vld [vmem:[#allocation7 + $0x30] sm:$0xff]  ;;  %v191_v48 = vld [vmem:[#allocation7 + $0x38] sm:$0xff]  ;;  %v419_v49 = vpack.c.bf16 %v77_v43, %v76_v42 }
  0x43   :  { %408 = vmatpush3.bf16.msra.mxu0 %v407_v19  ;;  %432 = vmatpush3.bf16.msra.mxu1 %v429_v34  ;;  %v421_v50 = vpack.c.bf16 %v95_v46, %v94_v44  ;;  %v78_v51 = vld [vmem:[#allocation5 + $0x60] sm:$0xff]  ;;  %v79_v52 = vld [vmem:[#allocation5 + $0x68] sm:$0xff]  ;;  %v96_v53 = vld [vmem:[#allocation5 + $0xf0] sm:$0xff]  ;;  %v441_v54 = vpack.c.bf16 %v191_v48, %v190_v47 }
  0x44   :  { %410 = vmatprep.subr.bf16.mxu0 %v409_v20  ;;  %434 = vmatprep.subr.bf16.mxu1 %v433_v37  ;;  %v97_v55 = vld [vmem:[#allocation5 + $0xf8] sm:$0xff]  ;;  %v192_v56 = vld [vmem:[#allocation7 + $0x40] sm:$0xff]  ;;  %v193_v57 = vld [vmem:[#allocation7 + $0x48] sm:$0xff]  ;;  %v423_v58 = vpack.c.bf16 %v79_v52, %v78_v51 }
  0x45   :  { %v425_v59 = vpack.c.bf16 %v97_v55, %v96_v53  ;;  %v80_v60 = vld [vmem:[#allocation5 + $0x70] sm:$0xff]  ;;  %v81_v61 = vld [vmem:[#allocation5 + $0x78] sm:$0xff]  ;;  %v445_v62 = vpack.c.bf16 %v193_v57, %v192_v56  ;;  %v62_v0 = vld [vmem:[#allocation2] sm:$0xff] }
  0x46   :  { %v427_v63 = vpack.c.bf16 %v81_v61, %v80_v60  ;;  %v65_v1 = vld [vmem:[#allocation2 + $0x18] sm:$0xff]  ;;  %v64_v2 = vld [vmem:[#allocation2 + $0x10] sm:$0xff]  ;;  %v196_v6 = vld [vmem:[#allocation7 + $0x60] sm:$0xff] }
  0x47   :  { %412 = vmatpush3.bf16.msra.mxu0 %v411_v27  ;;  %436 = vmatpush3.bf16.msra.mxu1 %v433_v37  ;;  %v194_v3 = vld [vmem:[#allocation7 + $0x50] sm:$0xff]  ;;  %v195_v4 = vld [vmem:[#allocation7 + $0x58] sm:$0xff]  ;;  %v197_v7 = vld [vmem:[#allocation7 + $0x68] sm:$0xff] }
  0x48   :  { %414 = vmatprep.subr.bf16.mxu0 %v413_v31  ;;  %438 = vmatprep.subr.bf16.mxu1 %v437_v45  ;;  %v449_v5 = vpack.c.bf16 %v195_v4, %v194_v3  ;;  %v453_v8 = vpack.c.bf16 %v197_v7, %v196_v6  ;;  %v198_v9 = vld [vmem:[#allocation7 + $0x70] sm:$0xff]  ;;  %v199_v10 = vld [vmem:[#allocation7 + $0x78] sm:$0xff]  ;;  %v304_v14 = vld [vmem:[%s666_s2] ss:$0 sm:$0xff]  ;;  %s570_s2 = smov [#allocation8]  }
  0x49   :  { %v457_v11 = vpack.c.bf16 %v199_v10, %v198_v9  ;;  %v305_v25 = vld [vmem:[%s668_s4] ss:$0 sm:$0xff]  ;;  %s291_s11 = sshll.u32 %s570_s2, 4  ;;  %s292_s11 = int_to_ptr.vmem [resolvable:$true] %s291_s11 }
  0x4a   :  { %s535_s12 = scalar_lea.vmem %s292_s11, 256  ;;  %p540_p11 = scmp.lt.s32.totalorder %s292_s11, %s292_s11 }
  0x4b   :  { %416 = vmatpush3.bf16.msra.mxu0 %v415_v40  ;;  %440 = vmatpush3.bf16.msra.mxu1 %v437_v45  ;;  %p536_p10 = scmp.ne.s32.totalorder %s292_s11, %s535_s12  ;;  %p541_p12 = scmp.lt.s32.totalorder %s535_s12, %s535_s12 }
  0x4c   :  { %418 = vmatprep.subr.bf16.mxu0 %v417_v41  ;;  %442 = vmatprep.subr.bf16.mxu1 %v441_v54 }
  0x4d   :  { %p542_p13 = por %p541_p12, %p540_p11 }
  0x4f   :  { %420 = vmatpush3.bf16.msra.mxu0 %v419_v49  ;;  %444 = vmatpush3.bf16.msra.mxu1 %v441_v54  ;;  %p543_p0 = pnand %p542_p13, %p536_p10 }
  0x50   :  { %422 = vmatprep.subr.bf16.mxu0 %v421_v50  ;;  %446 = vmatprep.subr.bf16.mxu1 %v445_v62 }
  0x53   :  { %424 = vmatpush3.bf16.msra.mxu0 %v423_v58  ;;  %448 = vmatpush3.bf16.msra.mxu1 %v445_v62 }
  0x54   :  { %426 = vmatprep.subr.bf16.mxu0 %v425_v59  ;;  %450 = vmatprep.subr.bf16.mxu1 %v449_v5 }
  0x57   :  { %428 = vmatpush3.bf16.msra.mxu0 %v427_v63  ;;  %452 = vmatpush3.bf16.msra.mxu1 %v449_v5 }
  0x58   :  { %454 = vmatprep.subr.bf16.mxu1 %v453_v8 }
  0x5a   :  { %170 = vmatmul.mubr.f32.vlgmr.msra.gmra.mrb[0].mxu0 %v62_v0 }
  0x5b   :  { %174 = vmatprep.mubr.f32.mxu0 %v65_v1  ;;  %456 = vmatpush3.bf16.msra.mxu1 %v453_v8 }
  0x5c   :  { %458 = vmatprep.subr.bf16.mxu1 %v457_v11 }
  0x5e   :  { %175 = vmatmul.mubr.f32.gmra.mrb[2].mxu0 %v64_v2 }
  0x5f   :  { %460 = vmatpush3.bf16.msra.mxu1 %v457_v11 }
 0x12d   :  { %v338_v12 = vpop.f32.mrb[0].mxu0 }
 0x12e   :  { %v339_v13 = vpop.f32.mrb[1].mxu0 }
 0x12f   :  { %v340_v15 = vadd.f32 %v339_v13, %v338_v12 }
 0x131   :  { %v341_v16 = vpop.f32.mrb[2].mxu0  ;;  %v172_v17 = vadd.f32 %v340_v15, %v304_v14 }
 0x132   :  { %v342_v18 = vpop.f32.mrb[3].mxu0 }
 0x133   :  { %v343_v19 = vadd.f32 %v342_v18, %v341_v16  ;;  %v180_v20 = vmul.f32 %v172_v17, %v172_v17 }
 0x135   :  { %v177_v21 = vadd.f32 %v343_v19, %v304_v14  ;;  %v182_v22 = vmul.f32 %v180_v20, %v172_v17 }
 0x137   :  { %v181_v23 = vmul.f32 %v177_v21, %v177_v21  ;;  %394 = vmatprep.mubr.f32.mxu1 %v182_v22 }
 0x139   :  { %v183_v24 = vmul.f32 %v181_v23, %v177_v21 }
 0x13b   :  { %395 = vmatmul.mubr.f32.vlgmr.msra.gmra.mrb[0].mxu1 %v183_v24 }
 0x20e   :  { %v396_v26 = vpop.f32.mrb[0].mxu1 }
 0x20f   :  { %v279_v27 = vadd.f32 %v396_v26, %v305_v25  ;;  %v273_v28 = vpop.f32.mrb[1].mxu1 }
 0x210   :  { %v274_v29 = vadd.f32 %v305_v25, %v273_v28 }
 0x211   :  { %v283_v30 = vmax.f32 %v279_v27, 0.0 }
 0x212   :  { %v282_v31 = vmax.f32 %v274_v29, 0.0 }
 0x213   :  { %285 = vst [vmem:[#allocation8 + $0x8] sm:$0xff] %v283_v30 }
 0x214   :  { %284 = vst [vmem:[#allocation8] sm:$0xff] %v282_v31 }
 0x215   :  { %546 = shalt.err (!%p543_p0)
}
 0x216   :  { %s547_s14 = scalar_lea.hbm %s669_s5, 256 }
 0x217   :  { %p548_p1 = scmp.ne.s32.totalorder %s669_s5, %s547_s14  ;;  %p551_p2 = scmp.lt.u32.totalorder %s547_s14, %s669_s5 }
 0x219   :  { %p553_p3 = pnand %p551_p2, %p548_p1 }
 0x21b   :  { %556 = shalt.err (!%p553_p3)
}
 0x21c   :  { %297 = dma.vmem_to_hbm [thread:$0]  %s292_s11, 256, %s669_s5, [#allocation4], %s564_s28, %s564_s28, %s565_s29  }
 0x21d   :  { %561 = dma.done.wait [#allocation4], 256  }
 0x21e   :  { %562 = vsyncadd [#allocation4], 4294967040 }
 0x21f   :  { %301 = vsyncpa [#allocation3], 1 }
 0x220   :  { %302 = vsyncpa [#allocation6], 1 }
 0x221   :  { %303 = vsyncpa [#allocation4], 1 }

</bundles_post_ra>
